<compile_context>
chip_gen: v7x
topology: tpu7x:2x2x1
jax: 0.10.0
libtpu: 0.0.40
codegen_flags: <defaults>
</compile_context>

<pallas_src>
import jax
import jax.numpy as jnp
from jax.experimental import pallas as pl
from jax.experimental.pallas import tpu as pltpu

IN_DIM = 28 * 28      # 784
HID = 128
OUT_DIM = 10


def _round_up(n, m):
    return ((n + m - 1) // m) * m


def mnist_dnn_kernel(x_ref,
                     w1_ref, b1_ref,
                     w2_ref, b2_ref,
                     w3_ref, b3_ref,
                     w4_ref, b4_ref,
                     out_ref):
    # Layer 1: f32 input tile, cast to bf16 in-kernel (VPU has huge slack),
    # (TB, 784) @ (784, 128) on the MXU with f32 accumulation, +bias, ReLU.
    x = x_ref[...].astype(jnp.bfloat16)
    h = jnp.dot(x, w1_ref[...], preferred_element_type=jnp.float32)
    h = jnp.maximum(h + b1_ref[...], 0.0)
    # Layer 2: (TB, 128) @ (128, 128), ReLU.
    h = jnp.dot(h.astype(jnp.bfloat16), w2_ref[...],
                preferred_element_type=jnp.float32)
    h = jnp.maximum(h + b2_ref[...], 0.0)
    # Layer 3: (TB, 128) @ (128, 128), ReLU.
    h = jnp.dot(h.astype(jnp.bfloat16), w3_ref[...],
                preferred_element_type=jnp.float32)
    h = jnp.maximum(h + b3_ref[...], 0.0)
    # Output layer: (TB, 128) @ (128, 10), +bias, sigmoid; narrow f32 store.
    logits = jnp.dot(h.astype(jnp.bfloat16), w4_ref[...],
                     preferred_element_type=jnp.float32)
    logits = logits + b4_ref[...]
    out_ref[...] = jax.nn.sigmoid(logits).astype(out_ref.dtype)


def _choose_tile(B, block_b):
    """Pick the batch tile size.

    - Large batches: use block_b (default 2048; safe on v5e/v6e/v7x VMEM).
    - Batches that fit one tile but are >= 1024 rows: split into two grid
      steps so both v7x TensorCores get work.
    - Small batches: a single block whose sublane dim equals the full array
      dim (legal even when not a multiple of 8).
    """
    if B > block_b:
        return block_b
    if B >= 1024:
        return min(block_b, _round_up(-(-B // 2), 8))
    return B


def mnist_dnn_forward(x_nchw, params, *, block_b=2048):
    """x_nchw: (B, 1, 28, 28) float32. params: dict of f32 weights/biases.

    Weights are stored (in, out) (transposed vs. PyTorch); kernel computes
    x @ W + b.  Returns (B, 10) float32 sigmoid outputs.
    """
    B = x_nchw.shape[0]
    # Same semantics as torch's x.view(x.size(0), 28*28) — row-major flatten.
    # Stays f32: the bf16 cast happens inside the kernel (one HBM trip for x).
    x = x_nchw.reshape(B, IN_DIM).astype(jnp.float32)

    # Parameters: bf16 weights (tiny, one-time cast), f32 biases.
    w1 = params["w1"].astype(jnp.bfloat16)
    w2 = params["w2"].astype(jnp.bfloat16)
    w3 = params["w3"].astype(jnp.bfloat16)
    w4 = params["w4"].astype(jnp.bfloat16)
    b1 = params["b1"].astype(jnp.float32)
    b2 = params["b2"].astype(jnp.float32)
    b3 = params["b3"].astype(jnp.float32)
    b4 = params["b4"].astype(jnp.float32)

    tb = _choose_tile(B, block_b)
    grid = (pl.cdiv(B, tb),)   # ragged last block is masked; no batch pad copy.

    # Resident-weight specs: constant index_map -> DMA'd once, reused each step.
    def resident(arr):
        return pl.BlockSpec(arr.shape, lambda i: (0, 0))

    flops = 2 * B * (IN_DIM * HID + HID * HID + HID * HID + HID * OUT_DIM)
    bytes_accessed = (x.size * 4
                      + (w1.size + w2.size + w3.size + w4.size) * 2
                      + (b1.size + b2.size + b3.size + b4.size) * 4
                      + B * OUT_DIM * 4)
    cost = pl.CostEstimate(flops=flops,
                           transcendentals=B * OUT_DIM,
                           bytes_accessed=bytes_accessed)

    out = pl.pallas_call(
        mnist_dnn_kernel,
        out_shape=jax.ShapeDtypeStruct((B, OUT_DIM), jnp.float32),
        grid=grid,
        in_specs=[
            pl.BlockSpec((tb, IN_DIM), lambda i: (i, 0)),
            resident(w1), resident(b1),
            resident(w2), resident(b2),
            resident(w3), resident(b3),
            resident(w4), resident(b4),
        ],
        out_specs=pl.BlockSpec((tb, OUT_DIM), lambda i: (i, 0)),
        compiler_params=pltpu.CompilerParams(
            dimension_semantics=("parallel",),
            vmem_limit_bytes=32 << 20,
        ),
        cost_estimate=cost,
    )(x, w1, b1, w2, b2, w3, b3, w4, b4)

    return out


def init_params(key):
    """Deterministic init matching PyTorch nn.Linear default (U[-1/sqrt(fan_in), +])."""
    dims = [(IN_DIM, HID), (HID, HID), (HID, HID), (HID, OUT_DIM)]
    params = {}
    for i, (fan_in, fan_out) in enumerate(dims, start=1):
        key, kw, kb = jax.random.split(key, 3)
        bound = 1.0 / jnp.sqrt(fan_in)
        # Stored as (in, out): kernel computes x @ W + b.
        params[f"w{i}"] = jax.random.uniform(
            kw, (fan_in, fan_out), jnp.float32, -bound, bound)
        params[f"b{i}"] = jax.random.uniform(
            kb, (1, fan_out), jnp.float32, -bound, bound)
    return params


def reference_forward(x_nchw, params):
    """Pure-JAX reference mirroring the kernel's bf16-in / f32-accumulate math."""
    B = x_nchw.shape[0]
    h = x_nchw.reshape(B, IN_DIM).astype(jnp.bfloat16)
    w1 = params["w1"].astype(jnp.bfloat16)
    w2 = params["w2"].astype(jnp.bfloat16)
    w3 = params["w3"].astype(jnp.bfloat16)
    w4 = params["w4"].astype(jnp.bfloat16)
    h = jnp.maximum(jnp.dot(h, w1, preferred_element_type=jnp.float32)
                    + params["b1"], 0.0)
    h = jnp.maximum(jnp.dot(h.astype(jnp.bfloat16), w2,
                            preferred_element_type=jnp.float32)
                    + params["b2"], 0.0)
    h = jnp.maximum(jnp.dot(h.astype(jnp.bfloat16), w3,
                            preferred_element_type=jnp.float32)
                    + params["b3"], 0.0)
    logits = jnp.dot(h.astype(jnp.bfloat16), w4,
                     preferred_element_type=jnp.float32) + params["b4"]
    return jax.nn.sigmoid(logits)


if __name__ == "__main__":
    key = jax.random.PRNGKey(0)
    key, kx = jax.random.split(key)
    params = init_params(key)

    # Small batch of MNIST-shaped inputs (NCHW like PyTorch).
    x = jax.random.normal(kx, (2, 1, 28, 28), jnp.float32)

    out = jax.block_until_ready(mnist_dnn_forward(x, params))
    ref = jax.block_until_ready(reference_forward(x, params))

    assert out.shape == (2, 10), out.shape
    assert jnp.allclose(out, ref, atol=2e-3, rtol=2e-3), (
        float(jnp.max(jnp.abs(out - ref))))
    print("KERNEL_OK")
</pallas_src>

<mosaic_0001>
module attributes {stable_mosaic.version = 11 : i64} {
  func.func @mnist_dnn_kernel(%arg0: i32, %arg1: memref<2x784xf32, #tpu.memory_space<vmem>>, %arg2: memref<784x128xbf16, #tpu.memory_space<vmem>>, %arg3: memref<1x128xf32, #tpu.memory_space<vmem>>, %arg4: memref<128x128xbf16, #tpu.memory_space<vmem>>, %arg5: memref<1x128xf32, #tpu.memory_space<vmem>>, %arg6: memref<128x128xbf16, #tpu.memory_space<vmem>>, %arg7: memref<1x128xf32, #tpu.memory_space<vmem>>, %arg8: memref<128x10xbf16, #tpu.memory_space<vmem>>, %arg9: memref<1x10xf32, #tpu.memory_space<vmem>>, %arg10: memref<2x10xf32, #tpu.memory_space<vmem>>) attributes {dimension_semantics = [#tpu.dimension_semantics<parallel>], iteration_bounds = array<i64: 1>, scalar_prefetch = 0 : i64, scratch_operands = 0 : i64, tpu.core_type = #tpu.core_type<tc>, window_params = [{transform_indices = @transform_0, window_bounds = array<i64: 2, 784>}, {pipeline_mode = #tpu.pipeline_mode<synchronous>, transform_indices = @transform_1, window_bounds = array<i64: 784, 128>}, {pipeline_mode = #tpu.pipeline_mode<synchronous>, transform_indices = @transform_2, window_bounds = array<i64: 1, 128>}, {pipeline_mode = #tpu.pipeline_mode<synchronous>, transform_indices = @transform_3, window_bounds = array<i64: 128, 128>}, {pipeline_mode = #tpu.pipeline_mode<synchronous>, transform_indices = @transform_4, window_bounds = array<i64: 1, 128>}, {pipeline_mode = #tpu.pipeline_mode<synchronous>, transform_indices = @transform_5, window_bounds = array<i64: 128, 128>}, {pipeline_mode = #tpu.pipeline_mode<synchronous>, transform_indices = @transform_6, window_bounds = array<i64: 1, 128>}, {pipeline_mode = #tpu.pipeline_mode<synchronous>, transform_indices = @transform_7, window_bounds = array<i64: 128, 10>}, {pipeline_mode = #tpu.pipeline_mode<synchronous>, transform_indices = @transform_8, window_bounds = array<i64: 1, 10>}, {transform_indices = @transform_9, window_bounds = array<i64: 2, 10>}]} {
    %c0 = arith.constant 0 : index
    %c0_0 = arith.constant 0 : index
    %0 = vector.load %arg1[%c0, %c0_0] : memref<2x784xf32, #tpu.memory_space<vmem>>, vector<2x784xf32>
    %1 = arith.truncf %0 : vector<2x784xf32> to vector<2x784xbf16>
    %c0_1 = arith.constant 0 : index
    %c0_2 = arith.constant 0 : index
    %2 = vector.load %arg2[%c0_1, %c0_2] : memref<784x128xbf16, #tpu.memory_space<vmem>>, vector<784x128xbf16>
    %cst = arith.constant dense<0.000000e+00> : vector<2x128xf32>
    %3 = tpu.matmul %1, %2, %cst {dimension_numbers = #tpu.dot_dimension_numbers<[1], [0], [0], [1], [0, 0, 1, 1], [], []>} : vector<2x784xbf16>, vector<784x128xbf16>, vector<2x128xf32> -> vector<2x128xf32>
    %c0_3 = arith.constant 0 : index
    %c0_4 = arith.constant 0 : index
    %4 = vector.load %arg3[%c0_3, %c0_4] : memref<1x128xf32, #tpu.memory_space<vmem>>, vector<1x128xf32>
    %5 = vector.broadcast %4 : vector<1x128xf32> to vector<2x128xf32>
    %6 = arith.addf %3, %5 : vector<2x128xf32>
    %cst_5 = arith.constant 0.000000e+00 : f32
    %7 = vector.broadcast %cst_5 : f32 to vector<2x128xf32>
    %8 = arith.maximumf %6, %7 : vector<2x128xf32>
    %9 = arith.truncf %8 : vector<2x128xf32> to vector<2x128xbf16>
    %c0_6 = arith.constant 0 : index
    %c0_7 = arith.constant 0 : index
    %10 = vector.load %arg4[%c0_6, %c0_7] : memref<128x128xbf16, #tpu.memory_space<vmem>>, vector<128x128xbf16>
    %cst_8 = arith.constant dense<0.000000e+00> : vector<2x128xf32>
    %11 = tpu.matmul %9, %10, %cst_8 {dimension_numbers = #tpu.dot_dimension_numbers<[1], [0], [0], [1], [0, 0, 1, 1], [], []>} : vector<2x128xbf16>, vector<128x128xbf16>, vector<2x128xf32> -> vector<2x128xf32>
    %c0_9 = arith.constant 0 : index
    %c0_10 = arith.constant 0 : index
    %12 = vector.load %arg5[%c0_9, %c0_10] : memref<1x128xf32, #tpu.memory_space<vmem>>, vector<1x128xf32>
    %13 = vector.broadcast %12 : vector<1x128xf32> to vector<2x128xf32>
    %14 = arith.addf %11, %13 : vector<2x128xf32>
    %cst_11 = arith.constant 0.000000e+00 : f32
    %15 = vector.broadcast %cst_11 : f32 to vector<2x128xf32>
    %16 = arith.maximumf %14, %15 : vector<2x128xf32>
    %17 = arith.truncf %16 : vector<2x128xf32> to vector<2x128xbf16>
    %c0_12 = arith.constant 0 : index
    %c0_13 = arith.constant 0 : index
    %18 = vector.load %arg6[%c0_12, %c0_13] : memref<128x128xbf16, #tpu.memory_space<vmem>>, vector<128x128xbf16>
    %cst_14 = arith.constant dense<0.000000e+00> : vector<2x128xf32>
    %19 = tpu.matmul %17, %18, %cst_14 {dimension_numbers = #tpu.dot_dimension_numbers<[1], [0], [0], [1], [0, 0, 1, 1], [], []>} : vector<2x128xbf16>, vector<128x128xbf16>, vector<2x128xf32> -> vector<2x128xf32>
    %c0_15 = arith.constant 0 : index
    %c0_16 = arith.constant 0 : index
    %20 = vector.load %arg7[%c0_15, %c0_16] : memref<1x128xf32, #tpu.memory_space<vmem>>, vector<1x128xf32>
    %21 = vector.broadcast %20 : vector<1x128xf32> to vector<2x128xf32>
    %22 = arith.addf %19, %21 : vector<2x128xf32>
    %cst_17 = arith.constant 0.000000e+00 : f32
    %23 = vector.broadcast %cst_17 : f32 to vector<2x128xf32>
    %24 = arith.maximumf %22, %23 : vector<2x128xf32>
    %25 = arith.truncf %24 : vector<2x128xf32> to vector<2x128xbf16>
    %c0_18 = arith.constant 0 : index
    %c0_19 = arith.constant 0 : index
    %26 = vector.load %arg8[%c0_18, %c0_19] : memref<128x10xbf16, #tpu.memory_space<vmem>>, vector<128x10xbf16>
    %cst_20 = arith.constant dense<0.000000e+00> : vector<2x10xf32>
    %27 = tpu.matmul %25, %26, %cst_20 {dimension_numbers = #tpu.dot_dimension_numbers<[1], [0], [0], [1], [0, 0, 1, 1], [], []>} : vector<2x128xbf16>, vector<128x10xbf16>, vector<2x10xf32> -> vector<2x10xf32>
    %c0_21 = arith.constant 0 : index
    %c0_22 = arith.constant 0 : index
    %28 = vector.load %arg9[%c0_21, %c0_22] : memref<1x10xf32, #tpu.memory_space<vmem>>, vector<1x10xf32>
    %29 = vector.broadcast %28 : vector<1x10xf32> to vector<2x10xf32>
    %30 = arith.addf %27, %29 : vector<2x10xf32>
    %31 = arith.negf %30 : vector<2x10xf32>
    %32 = math.exp %31 : vector<2x10xf32>
    %cst_23 = arith.constant 1.000000e+00 : f32
    %33 = vector.broadcast %cst_23 : f32 to vector<2x10xf32>
    %34 = arith.addf %33, %32 : vector<2x10xf32>
    %35 = arith.divf %33, %34 : vector<2x10xf32>
    %c0_24 = arith.constant 0 : index
    %c0_25 = arith.constant 0 : index
    %36 = vector.load %arg10[%c0_24, %c0_25] : memref<2x10xf32, #tpu.memory_space<vmem>>, vector<2x10xf32>
    tpu.vector_store %arg10[%c0_24, %c0_25], %35 {strides = array<i32>} : memref<2x10xf32, #tpu.memory_space<vmem>>, vector<2x10xf32>,
    return
  }
  func.func @transform_0(%arg0: i32) -> (i32, i32) {
    %c0_i32 = arith.constant 0 : i32
    %c0_i32_0 = arith.constant 0 : i32
    return %arg0, %c0_i32 : i32, i32
  }
  func.func @transform_1(%arg0: i32) -> (i32, i32) {
    %c0_i32 = arith.constant 0 : i32
    %c0_i32_0 = arith.constant 0 : i32
    %c0_i32_1 = arith.constant 0 : i32
    return %c0_i32, %c0_i32_0 : i32, i32
  }
  func.func @transform_2(%arg0: i32) -> (i32, i32) {
    %c0_i32 = arith.constant 0 : i32
    %c0_i32_0 = arith.constant 0 : i32
    %c0_i32_1 = arith.constant 0 : i32
    return %c0_i32, %c0_i32_0 : i32, i32
  }
  func.func @transform_3(%arg0: i32) -> (i32, i32) {
    %c0_i32 = arith.constant 0 : i32
    %c0_i32_0 = arith.constant 0 : i32
    %c0_i32_1 = arith.constant 0 : i32
    return %c0_i32, %c0_i32_0 : i32, i32
  }
  func.func @transform_4(%arg0: i32) -> (i32, i32) {
    %c0_i32 = arith.constant 0 : i32
    %c0_i32_0 = arith.constant 0 : i32
    %c0_i32_1 = arith.constant 0 : i32
    return %c0_i32, %c0_i32_0 : i32, i32
  }
  func.func @transform_5(%arg0: i32) -> (i32, i32) {
    %c0_i32 = arith.constant 0 : i32
    %c0_i32_0 = arith.constant 0 : i32
    %c0_i32_1 = arith.constant 0 : i32
    return %c0_i32, %c0_i32_0 : i32, i32
  }
  func.func @transform_6(%arg0: i32) -> (i32, i32) {
    %c0_i32 = arith.constant 0 : i32
    %c0_i32_0 = arith.constant 0 : i32
    %c0_i32_1 = arith.constant 0 : i32
    return %c0_i32, %c0_i32_0 : i32, i32
  }
  func.func @transform_7(%arg0: i32) -> (i32, i32) {
    %c0_i32 = arith.constant 0 : i32
    %c0_i32_0 = arith.constant 0 : i32
    %c0_i32_1 = arith.constant 0 : i32
    return %c0_i32, %c0_i32_0 : i32, i32
  }
  func.func @transform_8(%arg0: i32) -> (i32, i32) {
    %c0_i32 = arith.constant 0 : i32
    %c0_i32_0 = arith.constant 0 : i32
    %c0_i32_1 = arith.constant 0 : i32
    return %c0_i32, %c0_i32_0 : i32, i32
  }
  func.func @transform_9(%arg0: i32) -> (i32, i32) {
    %c0_i32 = arith.constant 0 : i32
    %c0_i32_0 = arith.constant 0 : i32
    return %arg0, %c0_i32 : i32, i32
  }
}

</mosaic_0001>

<bundles_post_ra>
// kernel: tpu_custom_call.1
= control target key start
LH: loop header
LB: loop body
LE: loop exit
PB: predicated region body
PF: predicated region fallthrough
CT: control target
= control target key end

     0   :  { %14 = vsyncpa [#allocation3], 0  ;;  %s1683_s0 = inlined_call_operand.vmem [shape: f32[2,784], index: 0, kind: input, shape index: {}]   ;;  %s1684_s1 = inlined_call_operand.hbm [shape: bf16[784,128], index: 1, kind: input, shape index: {}]   ;;  %s1685_s2 = inlined_call_operand.vmem [shape: f32[1,128], index: 2, kind: input, shape index: {}]   ;;  %s1686_s3 = inlined_call_operand.vmem [shape: bf16[128,128], index: 3, kind: input, shape index: {}]   ;;  %s1687_s4 = inlined_call_operand.hbm [shape: f32[1,128], index: 4, kind: input, shape index: {}]   ;;  %s1688_s5 = inlined_call_operand.hbm [shape: bf16[128,128], index: 5, kind: input, shape index: {}]   ;;  %s1689_s6 = inlined_call_operand.vmem [shape: f32[1,128], index: 6, kind: input, shape index: {}]   ;;  %s1690_s7 = inlined_call_operand.vmem [shape: bf16[128,10], index: 7, kind: input, shape index: {}]   ;;  %s1691_s8 = inlined_call_operand.vmem [shape: f32[1,10], index: 8, kind: input, shape index: {}]   ;;  %s1692_s9 = inlined_call_operand.hbm [shape: f32[2,10], index: 9, kind: output, shape index: {}]  }
   0x1   :  { %15 = vsyncpa [#allocation6], 0 }
   0x2   :  { %16 = vsyncpa [#allocation4], 0  ;;  %s1472_s30 = smov [#allocation5]   ;;  %s1473_s11 = smov [#allocation2]  }
   0x3   :  { %s41_s10 = sshll.u32 %s1472_s30, 4  ;;  %s24_s12 = sshll.u32 %s1473_s11, 4  ;;  %s42_s10 = int_to_ptr.vmem [resolvable:$true] %s41_s10  ;;  %s1531_s12 = int_to_ptr.vmem [resolvable:$true] %s24_s12 }
   0x4   :  { %s1378_s15 = scalar_lea.hbm %s1687_s4, 16 }
   0x5   :  { %p1379_p0 = scmp.ne.s32.totalorder %s1687_s4, %s1378_s15  ;;  %p1382_p1 = scmp.lt.u32.totalorder %s1378_s15, %s1687_s4 }
   0x7   :  { %p1384_p2 = pnand %p1382_p1, %p1379_p0 }
   0x9   :  { %1387 = shalt.err (!%p1384_p2)
}
   0xa   :  { %s1388_s20 = scalar_lea.vmem %s42_s10, 16  ;;  %s1392_s21 = scalar_lea.vmem %s42_s10, 32 }
   0xb   :  { %p1389_p3 = scmp.ne.s32.totalorder %s42_s10, %s1388_s20  ;;  %p1393_p4 = scmp.lt.s32.totalorder %s42_s10, %s42_s10 }
   0xc   :  { %p1394_p5 = scmp.lt.s32.totalorder %s1392_s21, %s1388_s20 }
   0xe   :  { %p1395_p6 = por %p1394_p5, %p1393_p4 }
  0x10   :  { %p1396_p7 = pnand %p1395_p6, %p1389_p3 }
  0x12   :  { %1399 = shalt.err (!%p1396_p7)
}
  0x13   :  { %44 = dma.hbm_to_vmem [thread:$0]  %s1687_s4, 16, %s42_s10, [#allocation6]  }
  0x14   :  { %s1400_s26 = scalar_lea.hbm %s1684_s1, 6272 }
  0x15   :  { %p1401_p8 = scmp.ne.s32.totalorder %s1684_s1, %s1400_s26  ;;  %p1404_p9 = scmp.lt.u32.totalorder %s1400_s26, %s1684_s1 }
  0x17   :  { %p1406_p10 = pnand %p1404_p9, %p1401_p8 }
  0x19   :  { %1409 = shalt.err (!%p1406_p10)
}
  0x1a   :  { %s1410_s11 = scalar_lea.vmem %s1531_s12, 6272  ;;  %p1415_p12 = scmp.lt.s32.totalorder %s1531_s12, %s1531_s12 }
  0x1b   :  { %p1411_p11 = scmp.ne.s32.totalorder %s1531_s12, %s1410_s11  ;;  %p1416_p13 = scmp.lt.s32.totalorder %s1410_s11, %s1410_s11 }
  0x1d   :  { %p1417_p0 = por %p1416_p13, %p1415_p12 }
  0x1f   :  { %p1418_p1 = pnand %p1417_p0, %p1411_p11 }
  0x21   :  { %1421 = shalt.err (!%p1418_p1)
}
  0x22   :  { %s1474_s4 = smov 64   ;;  %s1475_s10 = smov 4  }
  0x23   :  { %30 = dma.hbm_to_vmem [thread:$0]  %s1684_s1, 6272, %s1531_s12, [#allocation3], %s1474_s4, %s1474_s4, %s1475_s10  }
  0x24   :  { %s1476_s15 = smov [#allocation7]   ;;  %s1422_s19 = scalar_lea.hbm %s1688_s5, 1024 }
  0x25   :  { %s50_s16 = sshll.u32 %s1476_s15, 4  ;;  %p1423_p2 = scmp.ne.s32.totalorder %s1688_s5, %s1422_s19  ;;  %s51_s16 = int_to_ptr.vmem [resolvable:$true] %s50_s16 }
  0x26   :  { %p1426_p3 = scmp.lt.u32.totalorder %s1422_s19, %s1688_s5 }
  0x28   :  { %p1428_p4 = pnand %p1426_p3, %p1423_p2 }
  0x2a   :  { %1431 = shalt.err (!%p1428_p4)
}
  0x2b   :  { %s1432_s24 = scalar_lea.vmem %s51_s16, 1024  ;;  %p1437_p6 = scmp.lt.s32.totalorder %s51_s16, %s51_s16 }
  0x2c   :  { %p1433_p5 = scmp.ne.s32.totalorder %s51_s16, %s1432_s24  ;;  %p1438_p7 = scmp.lt.s32.totalorder %s1432_s24, %s1432_s24 }
  0x2e   :  { %p1439_p8 = por %p1438_p7, %p1437_p6 }
  0x30   :  { %p1440_p9 = pnand %p1439_p8, %p1433_p5 }
  0x32   :  { %1443 = shalt.err (!%p1440_p9)
}
  0x33   :  { %56 = dma.hbm_to_vmem [thread:$0]  %s1688_s5, 1024, %s51_s16, [#allocation6], %s1474_s4, %s1474_s4, %s1475_s10  }
  0x34   :  { %1466 = dma.done.wait [#allocation3], 6272  }
  0x35   :  { %1467 = vsyncadd [#allocation3], 4294961024 }
  0x36   :  { %1468 = dma.done.wait [#allocation6], 1040  }
  0x37   :  { %1469 = vsyncadd [#allocation6], 4294966256  ;;  %v1299_v0 = vld [vmem:[#allocation2 + $0x40] sm:$0xff]   ;;  %v1303_v4 = vld [vmem:[#allocation2 + $0x48] sm:$0xff]   ;;  %v1477_v21 = vmov 1983009808   ;;  %v81_v23 = vlaneseq }
  0x38   :  { %v1300_v1 = vld [vmem:[#allocation2] sm:$0xff]   ;;  %1129 = vmatprep.subr.bf16.mxu0 %v1299_v0  ;;  %v1304_v5 = vld [vmem:[#allocation2 + $0x8] sm:$0xff]   ;;  %v1307_v8 = vld [vmem:[#allocation2 + $0x50] sm:$0xff]   ;;  %v79_v22 = vunpack.c.l.s4 %v1477_v21  ;;  %v1478_v45 = vmov 0.0   ;;  %vm1479_vm0 = vmmov 0   ;;  %vm523_vm1 = vcmask 130048  }
  0x39   :  { %v1301_v2 = vld [vmem:[#allocation2 + $0xc0] sm:$0xff]   ;;  %1130 = vmatpush3.bf16.msra.mxu0 %v1300_v1  ;;  %v1305_v6 = vld [vmem:[#allocation2 + $0xc8] sm:$0xff]   ;;  %v1308_v9 = vld [vmem:[#allocation2 + $0x10] sm:$0xff]   ;;  %v82_v29 = vshrl.u32 %v81_v23, 7  ;;  %vm1032_vm2 = vcmask 74752  }
  0x3a   :  { %v1302_v3 = vld [vmem:[#allocation2 + $0x80] sm:$0xff]   ;;  %1151 = vmatprep.subr.bf16.mxu1 %v1301_v2  ;;  %1131 = vmatprep.subr.bf16.mxu0 %v1303_v4  ;;  %v1306_v7 = vld [vmem:[#allocation2 + $0x88] sm:$0xff]   ;;  %v1309_v10 = vld [vmem:[#allocation2 + $0xd0] sm:$0xff]   ;;  %v80_v28 = vunpack.c.0.s8 %v79_v22 }
  0x3b   :  { %1152 = vmatpush3.bf16.msra.mxu1 %v1302_v3  ;;  %v1310_v11 = vld [vmem:[#allocation2 + $0x90] sm:$0xff]   ;;  %v1311_v12 = vld [vmem:[#allocation2 + $0x58] sm:$0xff]   ;;  %v1315_v16 = vld [vmem:[#allocation2 + $0x60] sm:$0xff]  }
  0x3c   :  { %1153 = vmatprep.subr.bf16.mxu1 %v1305_v6  ;;  %v1312_v13 = vld [vmem:[#allocation2 + $0x18] sm:$0xff]   ;;  %v1316_v17 = vld [vmem:[#allocation2 + $0x20] sm:$0xff]   ;;  %v1319_v20 = vld [vmem:[#allocation2 + $0x68] sm:$0xff]   ;;  %v83_v34 = vsub.s32 %v80_v28, %v82_v29 }
  0x3d   :  { %1132 = vmatpush3.bf16.msra.mxu0 %v1304_v5  ;;  %v1313_v14 = vld [vmem:[#allocation2 + $0xd8] sm:$0xff]   ;;  %v1317_v18 = vld [vmem:[#allocation2 + $0xe0] sm:$0xff]   ;;  %v1320_v24 = vld [vmem:[#allocation2 + $0x28] sm:$0xff]  }
  0x3e   :  { %1133 = vmatprep.subr.bf16.mxu0 %v1307_v8  ;;  %v1314_v15 = vld [vmem:[#allocation2 + $0x98] sm:$0xff]   ;;  %v1318_v19 = vld [vmem:[#allocation2 + $0xa0] sm:$0xff]   ;;  %v1321_v25 = vld [vmem:[#allocation2 + $0xe8] sm:$0xff]  }
  0x3f   :  { %1154 = vmatpush3.bf16.msra.mxu1 %v1306_v7  ;;  %v1322_v26 = vld [vmem:[#allocation2 + $0xa8] sm:$0xff]   ;;  %v1323_v27 = vld [vmem:[#allocation2 + $0x70] sm:$0xff]   ;;  %v1327_v33 = vld [vmem:[#allocation2 + $0x78] sm:$0xff]  }
  0x40   :  { %1155 = vmatprep.subr.bf16.mxu1 %v1309_v10  ;;  %v1324_v30 = vld [vmem:[#allocation2 + $0x30] sm:$0xff]   ;;  %v1328_v35 = vld [vmem:[#allocation2 + $0x38] sm:$0xff]   ;;  %v73_v37 = vld [vmem:[%s1683_s0] sm:$0xff] }
  0x41   :  { %1134 = vmatpush3.bf16.msra.mxu0 %v1308_v9  ;;  %v1325_v31 = vld [vmem:[#allocation2 + $0xf0] sm:$0xff]   ;;  %v1329_v36 = vld [vmem:[#allocation2 + $0xf8] sm:$0xff]   ;;  %v84_v38 = vrot.slane %v73_v37, %v83_v34  ;;  %v77_v40 = vcombine.high %v73_v37, %v73_v37  ;;  %v1331_v41 = vld [vmem:[#allocation2 + $0x140] sm:$0xff]  }
  0x42   :  { %1135 = vmatprep.subr.bf16.mxu0 %v1311_v12  ;;  %v1326_v32 = vld [vmem:[#allocation2 + $0xb0] sm:$0xff]   ;;  %v1330_v39 = vld [vmem:[#allocation2 + $0xb8] sm:$0xff]   ;;  %v1333_v48 = vld [vmem:[#allocation2 + $0x100] sm:$0xff]  }
  0x43   :  { %1156 = vmatpush3.bf16.msra.mxu1 %v1310_v11  ;;  %v92_v42 = vcombine.high %v84_v38, %v84_v38  ;;  %v91_v43 = vrot.slane %v77_v40, %v83_v34  ;;  %v117_v44 = vpack.c.bf16 %v84_v38, %v84_v38  ;;  %v1334_v50 = vld [vmem:[#allocation2 + $0x148] sm:$0xff]   ;;  %v1336_v53 = vld [vmem:[#allocation2 + $0x150] sm:$0xff]   ;;  %v1338_v55 = vld [vmem:[#allocation2 + $0x158] sm:$0xff]  }
  0x44   :  { %1157 = vmatprep.subr.bf16.mxu1 %v1313_v14  ;;  %v1335_v52 = vld [vmem:[#allocation2 + $0x108] sm:$0xff]   ;;  %v1337_v54 = vld [vmem:[#allocation2 + $0x110] sm:$0xff]   ;;  %v1339_v56 = vld [vmem:[#allocation2 + $0x118] sm:$0xff]  }
  0x45   :  { %1136 = vmatpush3.bf16.msra.mxu0 %v1312_v13  ;;  %v118_v46 = vpack.c.bf16 %v92_v42, %v92_v42  ;;  %v93_v47 = vcombine.high %v91_v43, %v91_v43  ;;  %v119_v49 = vpack.c.bf16 %v91_v43, %v91_v43  ;;  %v1340_v57 = vld [vmem:[#allocation2 + $0x160] sm:$0xff]   ;;  %v74_v59 = vld [vmem:[%s1683_s0 + $0x8] sm:$0x3f]  ;;  %v1344_v5 = vld [vmem:[#allocation2 + $0x170] sm:$0xff]  }
  0x46   :  { %1137 = vmatprep.subr.bf16.mxu0 %v1315_v16  ;;  %v1348_v58 = vld [vmem:[#allocation2 + $0x180] sm:$0xff]   ;;  %v94_v61 = vcombine.high %v74_v59, %v74_v59  ;;  %v101_v62 = vrot.slane %v74_v59, %v83_v34  ;;  %v1342_v63 = vld [vmem:[#allocation2 + $0x168] sm:$0xff]   ;;  %v1345_v6 = vld [vmem:[#allocation2 + $0x130] sm:$0xff]  }
  0x47   :  { %1158 = vmatpush3.bf16.msra.mxu1 %v1314_v15  ;;  %559 = vmatprep.mubr.bf16.mxu0 %v118_v46  ;;  %v120_v51 = vpack.c.bf16 %v93_v47, %v93_v47  ;;  %v1341_v60 = vld [vmem:[#allocation2 + $0x120] sm:$0xff]   ;;  %v1343_v2 = vld [vmem:[#allocation2 + $0x128] sm:$0xff]   ;;  %v1346_v7 = vld [vmem:[#allocation2 + $0x178] sm:$0xff]  }
  0x48   :  { %1159 = vmatprep.subr.bf16.mxu1 %v1317_v18  ;;  %v108_v0 = vrot.slane %v94_v61, %v83_v34  ;;  %v109_v1 = vcombine.high %v101_v62, %v101_v62  ;;  %v1347_v8 = vld [vmem:[#allocation2 + $0x138] sm:$0xff]   ;;  %v121_v9 = vpack.c.bf16 %v101_v62, %v101_v62  ;;  %v1350_v10 = vld [vmem:[%s1686_s3] sm:$0xff]   ;;  %v1351_v11 = vld [vmem:[%s1686_s3 + $0x8] sm:$0xff]  }
  0x49   :  { %1138 = vmatpush3.bf16.msra.mxu0 %v1316_v17  ;;  %599 = vmatprep.mubr.bf16.mxu1 %v120_v51  ;;  %v1352_v12 = vld [vmem:[%s1686_s3 + $0x10] sm:$0xff]   ;;  %v1353_v13 = vld [vmem:[%s1686_s3 + $0x18] sm:$0xff]   ;;  %v1354_v14 = vld [vmem:[%s1686_s3 + $0x20] sm:$0xff]  }
  0x4a   :  { %1139 = vmatprep.subr.bf16.mxu0 %v1319_v20  ;;  %v122_v3 = vpack.c.bf16 %v109_v1, %v109_v1  ;;  %v123_v4 = vpack.c.bf16 %v108_v0, %v108_v0  ;;  %v1355_v15 = vld [vmem:[%s1686_s3 + $0x28] sm:$0xff]   ;;  %v1356_v16 = vld [vmem:[%s1686_s3 + $0x30] sm:$0xff]   ;;  %v1357_v17 = vld [vmem:[%s1686_s3 + $0x38] sm:$0xff]  }
  0x4b   :  { %1160 = vmatpush3.bf16.msra.mxu1 %v1318_v19  ;;  %v1358_v18 = vld [vmem:[#allocation7] sm:$0xff]   ;;  %v1359_v19 = vld [vmem:[#allocation7 + $0x8] sm:$0xff]   ;;  %v1360_v20 = vld [vmem:[#allocation7 + $0x10] sm:$0xff]  }
  0x4c   :  { %1161 = vmatprep.subr.bf16.mxu1 %v1321_v25  ;;  %v1361_v21 = vld [vmem:[#allocation7 + $0x18] sm:$0xff]   ;;  %v1362_v22 = vld [vmem:[#allocation7 + $0x20] sm:$0xff]   ;;  %v1363_v23 = vld [vmem:[#allocation7 + $0x28] sm:$0xff]  }
  0x4d   :  { %1140 = vmatpush3.bf16.msra.mxu0 %v1320_v24  ;;  %v1050_v25 = vld [vmem:[%s1685_s2] ss:$0 sm:$0xff]  ;;  %v1101_v59 = vld [vmem:[#allocation5] ss:$0 sm:$0xff] }
  0x4e   :  { %1141 = vmatprep.subr.bf16.mxu0 %v1323_v27  ;;  %v1364_v51 = vld [vmem:[#allocation7 + $0x30] sm:$0xff]  }
  0x4f   :  { %1162 = vmatpush3.bf16.msra.mxu1 %v1322_v26 }
  0x50   :  { %1163 = vmatprep.subr.bf16.mxu1 %v1325_v31 }
  0x51   :  { %1142 = vmatpush3.bf16.msra.mxu0 %v1324_v30 }
  0x52   :  { %1143 = vmatprep.subr.bf16.mxu0 %v1327_v33 }
  0x53   :  { %1164 = vmatpush3.bf16.msra.mxu1 %v1326_v32 }
  0x54   :  { %1165 = vmatprep.subr.bf16.mxu1 %v1329_v36 }
  0x55   :  { %1144 = vmatpush3.bf16.msra.mxu0 %v1328_v35 }
  0x56   :  { %1173 = vmatprep.subr.bf16.mxu0 %v1331_v41 }
  0x57   :  { %1166 = vmatpush3.bf16.msra.mxu1 %v1330_v39 }
  0x58   :  { %1224 = vmatprep.subr.bf16.mxu1 %v1478_v45  ;;  %560 = vmatmul.mubr.bf16.vlgmr.msra.gmra.mrb[0].mxu0 %v117_v44 }
  0x59   :  { %1174 = vmatpush3.bf16.msra.mxu0 %v1333_v48  ;;  %639 = vmatprep.mubr.bf16.mxu0 %v122_v3  ;;  %v1372_v3 = vld [vmem:[%s1690_s7 + $0x30] sm:$0xff]  }
  0x5a   :  { %600 = vmatmul.mubr.bf16.vlgmr.msra.gmra.mrb[0].mxu1 %v119_v49  ;;  %1175 = vmatprep.subr.bf16.mxu0 %v1334_v50 }
  0x5b   :  { %1226 = vmatprep.mubr.msk.bf16.mxu1 %vm1479_vm0, %v1478_v45  ;;  %1225 = vmatpush3.bf16.msra.mxu1 %v1348_v58  ;;  %v1371_v58 = vld [vmem:[%s1690_s7 + $0x28] sm:$0xff]  }
  0x5c   :  { %1230 = vmatprep.subr.bf16.mxu1 %v1478_v45 }
  0x5d   :  { %1176 = vmatpush3.bf16.msra.mxu0 %v1335_v52  ;;  %v1365_v52 = vld [vmem:[#allocation7 + $0x38] sm:$0xff]  }
  0x5e   :  { %1177 = vmatprep.subr.bf16.mxu0 %v1336_v53  ;;  %v1366_v53 = vld [vmem:[%s1690_s7] sm:$0xff]  }
  0x61   :  { %1178 = vmatpush3.bf16.msra.mxu0 %v1337_v54  ;;  %v1367_v54 = vld [vmem:[%s1690_s7 + $0x8] sm:$0xff]  }
  0x62   :  { %1179 = vmatprep.subr.bf16.mxu0 %v1338_v55  ;;  %1227 = vmatmul.mubr.msk.bf16.vlgmr.msra.gmra.mrb[4].mxu1 %vm523_vm1, %v123_v4  ;;  %v1368_v55 = vld [vmem:[%s1690_s7 + $0x10] sm:$0xff]   ;;  %v1373_v4 = vld [vmem:[%s1690_s7 + $0x38] sm:$0xff]  }
  0x63   :  { %1246 = vmatprep.mubr.msk.bf16.mxu1 %vm1479_vm0, %v1478_v45  ;;  %1231 = vmatpush3.bf16.msra.mxu1 %v1350_v10 }
  0x64   :  { %1232 = vmatprep.subr.bf16.mxu1 %v1478_v45 }
  0x65   :  { %1180 = vmatpush3.bf16.msra.mxu0 %v1339_v56  ;;  %v1369_v56 = vld [vmem:[%s1690_s7 + $0x18] sm:$0xff]  }
  0x66   :  { %1181 = vmatprep.subr.bf16.mxu0 %v1340_v57  ;;  %v1370_v57 = vld [vmem:[%s1690_s7 + $0x20] sm:$0xff]  }
  0x67   :  { %1233 = vmatpush3.bf16.msra.mxu1 %v1351_v11 }
  0x68   :  { %1234 = vmatprep.subr.bf16.mxu1 %v1478_v45 }
  0x69   :  { %1182 = vmatpush3.bf16.msra.mxu0 %v1341_v60 }
  0x6a   :  { %1183 = vmatprep.subr.bf16.mxu0 %v1342_v63 }
  0x6b   :  { %1235 = vmatpush3.bf16.msra.mxu1 %v1352_v12 }
  0x6c   :  { %1236 = vmatprep.subr.bf16.mxu1 %v1478_v45 }
  0x6d   :  { %1184 = vmatpush3.bf16.msra.mxu0 %v1343_v2 }
  0x6e   :  { %1185 = vmatprep.subr.bf16.mxu0 %v1344_v5  ;;  %v1110_v5 = vld [vmem:[%s1689_s6] ss:$0 sm:$0xff]  ;;  %s1480_s6 = smov [#allocation8]  }
  0x6f   :  { %1237 = vmatpush3.bf16.msra.mxu1 %v1353_v13  ;;  %s1040_s7 = sshll.u32 %s1480_s6, 4  ;;  %s1041_s7 = int_to_ptr.vmem [resolvable:$true] %s1040_s7 }
  0x70   :  { %1238 = vmatprep.subr.bf16.mxu1 %v1478_v45  ;;  %s1444_s17 = scalar_lea.vmem %s1041_s7, 32  ;;  %p1449_p11 = scmp.lt.s32.totalorder %s1041_s7, %s1041_s7 }
  0x71   :  { %1186 = vmatpush3.bf16.msra.mxu0 %v1345_v6  ;;  %p1445_p10 = scmp.ne.s32.totalorder %s1041_s7, %s1444_s17  ;;  %p1450_p12 = scmp.lt.s32.totalorder %s1444_s17, %s1444_s17 }
  0x72   :  { %1187 = vmatprep.subr.bf16.mxu0 %v1346_v7 }
  0x73   :  { %1239 = vmatpush3.bf16.msra.mxu1 %v1354_v14  ;;  %p1451_p13 = por %p1450_p12, %p1449_p11 }
  0x74   :  { %1240 = vmatprep.subr.bf16.mxu1 %v1478_v45 }
  0x75   :  { %1188 = vmatpush3.bf16.msra.mxu0 %v1347_v8  ;;  %p1452_p0 = pnand %p1451_p13, %p1445_p10 }
  0x76   :  { %1250 = vmatprep.subr.bf16.mxu0 %v1478_v45 }
  0x77   :  { %1241 = vmatpush3.bf16.msra.mxu1 %v1355_v15 }
  0x78   :  { %640 = vmatmul.mubr.bf16.vlgmr.msra.gmra.mrb[4].mxu0 %v121_v9  ;;  %1242 = vmatprep.subr.bf16.mxu1 %v1478_v45 }
  0x79   :  { %1266 = vmatprep.mubr.msk.bf16.mxu0 %vm1479_vm0, %v1478_v45  ;;  %1251 = vmatpush3.bf16.msra.mxu0 %v1358_v18 }
  0x7a   :  { %1252 = vmatprep.subr.bf16.mxu0 %v1478_v45 }
  0x7b   :  { %1243 = vmatpush3.bf16.msra.mxu1 %v1356_v16 }
  0x7c   :  { %1244 = vmatprep.subr.bf16.mxu1 %v1478_v45 }
  0x7d   :  { %1253 = vmatpush3.bf16.msra.mxu0 %v1359_v19 }
  0x7e   :  { %1254 = vmatprep.subr.bf16.mxu0 %v1478_v45 }
  0x7f   :  { %1245 = vmatpush3.bf16.msra.mxu1 %v1357_v17 }
  0x80   :  { %1270 = vmatprep.subr.bf16.mxu1 %v1478_v45 }
  0x81   :  { %1255 = vmatpush3.bf16.msra.mxu0 %v1360_v20 }
  0x82   :  { %1256 = vmatprep.subr.bf16.mxu0 %v1478_v45 }
  0x85   :  { %1257 = vmatpush3.bf16.msra.mxu0 %v1361_v21 }
  0x86   :  { %1258 = vmatprep.subr.bf16.mxu0 %v1478_v45 }
  0x89   :  { %1259 = vmatpush3.bf16.msra.mxu0 %v1362_v22 }
  0x8a   :  { %1260 = vmatprep.subr.bf16.mxu0 %v1478_v45 }
  0x8d   :  { %1261 = vmatpush3.bf16.msra.mxu0 %v1363_v23 }
  0x8e   :  { %1262 = vmatprep.subr.bf16.mxu0 %v1478_v45 }
  0x91   :  { %1263 = vmatpush3.bf16.msra.mxu0 %v1364_v51 }
  0x92   :  { %1264 = vmatprep.subr.bf16.mxu0 %v1478_v45 }
  0x95   :  { %1265 = vmatpush3.bf16.msra.mxu0 %v1365_v52 }
 0x12b   :  { %v1145_v24 = vpop.f32.mrb[0].mxu0 }
 0x12c   :  { %v1146_v26 = vpop.f32.mrb[1].mxu0 }
 0x12d   :  { %v1147_v27 = vadd.f32 %v1146_v26, %v1145_v24  ;;  %v1148_v28 = vpop.f32.mrb[2].mxu0  ;;  %v1167_v29 = vpop.f32.mrb[0].mxu1 }
 0x12e   :  { %v1149_v30 = vpop.f32.mrb[3].mxu0  ;;  %v1168_v31 = vpop.f32.mrb[1].mxu1 }
 0x12f   :  { %v562_v32 = vadd.f32 %v1147_v27, %v1050_v25  ;;  %v1169_v33 = vadd.f32 %v1168_v31, %v1167_v29  ;;  %v1170_v34 = vpop.f32.mrb[2].mxu1 }
 0x130   :  { %v1171_v35 = vpop.f32.mrb[3].mxu1 }
 0x131   :  { %v602_v36 = vadd.f32 %v1169_v33, %v562_v32 }
 0x135   :  { %v681_v37 = vpop.f32.mrb[4].mxu1 }
 0x136   :  { %v1228_v38 = vpop.f32.mrb[5].mxu1 }
 0x137   :  { %v684_v39 = vpop.f32.mrb[6].mxu1 }
 0x138   :  { %v1229_v40 = vpop.f32.mrb[7].mxu1 }
 0x14b   :  { %v1189_v41 = vpop.f32.mrb[4].mxu0 }
 0x14c   :  { %v1190_v42 = vpop.f32.mrb[5].mxu0 }
 0x14d   :  { %v1191_v43 = vadd.f32 %v1190_v42, %v1189_v41  ;;  %v1192_v44 = vpop.f32.mrb[6].mxu0 }
 0x14e   :  { %v1193_v46 = vpop.f32.mrb[7].mxu0 }
 0x14f   :  { %v642_v47 = vadd.f32 %v1191_v43, %v602_v36 }
 0x151   :  { %v682_v48 = vadd.f32 %v681_v37, %v642_v47 }
 0x153   :  { %v687_v49 = vmax.f32 %v682_v48, 0.0 }
 0x155   :  { %v688_v50 = vpack.c.bf16 %v687_v49, %v687_v49 }
 0x157   :  { %1247 = vmatmul.mubr.bf16.vlgmr.msra.gmra.mrb[8].mxu1 %v688_v50 }
 0x158   :  { %1286 = vmatprep.mubr.msk.bf16.mxu1 %vm1479_vm0, %v1478_v45  ;;  %1271 = vmatpush3.bf16.msra.mxu1 %v1366_v53 }
 0x159   :  { %1272 = vmatprep.subr.bf16.mxu1 %v1478_v45 }
 0x15c   :  { %1273 = vmatpush3.bf16.msra.mxu1 %v1367_v54 }
 0x15d   :  { %1274 = vmatprep.subr.bf16.mxu1 %v1478_v45 }
 0x160   :  { %1275 = vmatpush3.bf16.msra.mxu1 %v1368_v55 }
 0x161   :  { %1276 = vmatprep.subr.bf16.mxu1 %v1478_v45 }
 0x164   :  { %1277 = vmatpush3.bf16.msra.mxu1 %v1369_v56 }
 0x165   :  { %1278 = vmatprep.subr.bf16.mxu1 %v1478_v45 }
 0x168   :  { %1279 = vmatpush3.bf16.msra.mxu1 %v1370_v57 }
 0x169   :  { %1280 = vmatprep.subr.bf16.mxu1 %v1478_v45 }
 0x16c   :  { %1281 = vmatpush3.bf16.msra.mxu1 %v1371_v58 }
 0x16d   :  { %1282 = vmatprep.subr.bf16.mxu1 %v1478_v45 }
 0x170   :  { %1283 = vmatpush3.bf16.msra.mxu1 %v1372_v3 }
 0x171   :  { %1284 = vmatprep.subr.bf16.mxu1 %v1478_v45  ;;  %v1119_v45 = vld [vmem:[%s1691_s8] ss:$0 sm:$0xff] }
 0x174   :  { %1285 = vmatpush3.bf16.msra.mxu1 %v1373_v4 }
 0x22a   :  { %v794_v60 = vpop.f32.mrb[8].mxu1 }
 0x22b   :  { %v795_v61 = vadd.f32 %v1101_v59, %v794_v60  ;;  %v1248_v62 = vpop.f32.mrb[9].mxu1 }
 0x22c   :  { %v797_v63 = vpop.f32.mrb[10].mxu1 }
 0x22d   :  { %v800_v0 = vmax.f32 %v795_v61, 0.0  ;;  %v1249_v1 = vpop.f32.mrb[11].mxu1 }
 0x22f   :  { %v801_v2 = vpack.c.bf16 %v800_v0, %v800_v0 }
 0x231   :  { %1267 = vmatmul.mubr.bf16.vlgmr.msra.gmra.mrb[8].mxu0 %v801_v2 }
 0x304   :  { %v907_v6 = vpop.f32.mrb[8].mxu0 }
 0x305   :  { %v908_v7 = vadd.f32 %v1110_v5, %v907_v6  ;;  %v1268_v8 = vpop.f32.mrb[9].mxu0 }
 0x306   :  { %v910_v9 = vpop.f32.mrb[10].mxu0 }
 0x307   :  { %v913_v10 = vmax.f32 %v908_v7, 0.0  ;;  %v1269_v11 = vpop.f32.mrb[11].mxu0 }
 0x309   :  { %v914_v12 = vpack.c.bf16 %v913_v10, %v913_v10 }
 0x30b   :  { %1287 = vmatmul.mubr.bf16.vlgmr.msra.gmra.mrb[12].mxu1 %v914_v12 }
 0x3de   :  { %v1020_v13 = vpop.f32.mrb[12].mxu1 }
 0x3df   :  { %v1021_v14 = vadd.f32 %v1119_v45, %v1020_v13  ;;  %v1288_v15 = vpop.f32.mrb[13].mxu1 }
 0x3e0   :  { %v1023_v16 = vpop.f32.mrb[14].mxu1 }
 0x3e1   :  { %v1128_v17 = vmul.f32 -1.442695, %v1021_v14  ;;  %v1289_v18 = vpop.f32.mrb[15].mxu1 }
 0x3e3   :  { %1374 = vpow2.f32 %v1128_v17 }
 0x3ed   :  { %v1375_v19 = vpop.eup %1374 }
 0x3ee   :  { %v1029_v20 = vadd.f32 1.0, %v1375_v19 }
 0x3f0   :  { %1376 = vrcp.f32 %v1029_v20 }
 0x3fa   :  { %v1377_v21 = vpop.eup %1376 }
 0x3fb   :  { %1033 = vst.msk [vmem:[#allocation8] sm:$0x3] %vm1032_vm2, %v1377_v21 }
 0x3fc   :  { %1455 = shalt.err (!%p1452_p0)
}
 0x3fd   :  { %s1456_s19 = scalar_lea.hbm %s1692_s9, 32 }
 0x3fe   :  { %p1457_p1 = scmp.ne.s32.totalorder %s1692_s9, %s1456_s19  ;;  %p1460_p2 = scmp.lt.u32.totalorder %s1456_s19, %s1692_s9 }
 0x400   :  { %p1462_p3 = pnand %p1460_p2, %p1457_p1 }
 0x402   :  { %1465 = shalt.err (!%p1462_p3)
}
 0x403   :  { %1043 = dma.vmem_to_hbm [thread:$0]  %s1041_s7, 32, %s1692_s9, [#allocation4]  }
 0x404   :  { %1470 = dma.done.wait [#allocation4], 32  }
 0x405   :  { %1471 = vsyncadd [#allocation4], 4294967264 }
 0x406   :  { %1047 = vsyncpa [#allocation3], 1 }
 0x407   :  { %1048 = vsyncpa [#allocation6], 1 }
 0x408   :  { %1049 = vsyncpa [#allocation4], 1 }

</bundles_post_ra>
